<compile_context>
chip_gen: v6e
topology: v6e:2x2x1
jax: 0.10.0
libtpu: 0.0.40
codegen_flags: <defaults>
</compile_context>

<pallas_src>
import functools

import numpy as np
import jax
import jax.numpy as jnp
from jax.experimental import pallas as pl
from jax.experimental.pallas import tpu as pltpu


class CFA:
    BG = 0
    GB = 1
    RG = 2
    GR = 3


# (red_row_parity, red_col_parity, blue_row_parity, blue_col_parity)
_CFA_PARITY = {
    CFA.BG: (0, 0, 1, 1),
    CFA.GB: (0, 1, 1, 0),
    CFA.RG: (1, 1, 0, 0),
    CFA.GR: (1, 0, 0, 1),
}


def _vmem_capacity_bytes():
    """Physical VMEM per TensorCore; conservative (v7x-sized) fallback."""
    try:
        return int(pltpu.get_tpu_info().vmem_capacity_bytes)
    except Exception:
        return 64 * 1024 * 1024


def _pick_tile_h(Hp, W, B, budget_bytes, sub):
    """Largest multiple-of-`sub` divisor of Hp whose per-step VMEM footprint
    (~16*TH*W*4 B: double-buffered input strip + 3-plane output strip + live
    f32 temporaries) fits `budget_bytes`.  If the batch axis alone cannot
    balance v7x's two TensorCores, prefer an even (or large) strip count."""
    th_max = budget_bytes // (64 * max(W, 1))
    th_max = max(sub, (th_max // sub) * sub)
    th_max = min(th_max, Hp)
    cands = [c for c in range(sub, th_max + 1, sub) if Hp % c == 0]
    if not cands:
        cands = [sub]
    if B % 2 == 1:
        balanced = [c for c in cands if (Hp // c) % 2 == 0 or (Hp // c) >= 8]
        if balanced:
            cands = balanced
    return max(cands)


def _raw_to_rgb_kernel(x_ref, prev_ref, next_ref, o_ref, *, ry, rx, by, bx):
    t = pl.program_id(1)
    nt = pl.num_programs(1)

    x = x_ref[...].astype(jnp.float32)              # (TH, W) current strip
    TH, W = x.shape
    HB = prev_ref.shape[0]

    # Halo rows.  The BlockSpecs deliver the HB-row block containing the row
    # just above / below this strip (or the block holding the reflect row at
    # the image edge).  Which row inside the block only depends on the scalar
    # first/last-tile condition -> one (1, W) select per halo.
    hp = prev_ref[...].astype(jnp.float32)          # (HB, W)
    hn = next_ref[...].astype(jnp.float32)          # (HB, W)
    prev_row = jnp.where(t == 0, hp[1:2, :], hp[HB - 1:HB, :])           # (1, W)
    next_row = jnp.where(t == nt - 1, hn[HB - 2:HB - 1, :], hn[0:1, :])  # (1, W)

    ci = jax.lax.broadcasted_iota(jnp.int32, (1, W), 1)    # lane (column) index
    ri = jax.lax.broadcasted_iota(jnp.int32, (TH, 1), 0)   # sublane (local row)

    def lr_sum(a):
        # left + right neighbours with reflect at the image's W edges.
        # Lane shifts are XLU rolls; only the boundary column is patched.
        n = a.shape[1]
        left = jnp.where(ci == 0, a[:, 1:2], pltpu.roll(a, 1, axis=1))
        right = jnp.where(ci == n - 1, a[:, n - 2:n - 1],
                          pltpu.roll(a, n - 1, axis=1))
        return left + right

    S = lr_sum(x)                 # x[y, x-1] + x[y, x+1]   on this strip
    S_prev = lr_sum(prev_row)     # same on the row above the strip
    S_next = lr_sum(next_row)     # same on the row below the strip

    # Vertical neighbour sums via sublane rotations (XLU slot); only the two
    # boundary rows are patched with the halo rows.  No concatenates, no
    # materialized U/D/SU/SD temporaries.
    top = ri == 0                 # (TH, 1)
    bot = ri == TH - 1

    V = pltpu.roll(x, 1, axis=0) + pltpu.roll(x, TH - 1, axis=0)   # x[y-1]+x[y+1]
    V = jnp.where(top, prev_row + x[1:2, :], V)
    V = jnp.where(bot, next_row + x[TH - 2:TH - 1, :], V)

    Sd = pltpu.roll(S, 1, axis=0) + pltpu.roll(S, TH - 1, axis=0)  # S[y-1]+S[y+1]
    Sd = jnp.where(top, S_prev + S[1:2, :], Sd)
    Sd = jnp.where(bot, S_next + S[TH - 2:TH - 1, :], Sd)

    hmean = 0.5 * S               # horizontal mean
    vmean = 0.5 * V               # vertical mean
    dmean = 0.25 * Sd             # diagonal mean  (== 0.25*(UL+UR+DL+DR))
    xmean = 0.25 * (S + V)        # cross mean     (== 0.25*(U+D+L+R))

    # Parity masks from 1-D iotas; TH is even so local row parity == global.
    rpar = ri & 1                 # (TH, 1)
    cpar = ci & 1                 # (1, W)

    def chan(py, px):
        # Flattened select tree (no full-tile boolean AND):
        #   row==py & col==px -> x ; row==py -> hmean ; col==px -> vmean ; else dmean
        row_m = rpar == py
        col_m = cpar == px
        return jnp.where(row_m,
                         jnp.where(col_m, x, hmean),
                         jnp.where(col_m, vmean, dmean))

    ru = chan(ry, rx)
    bu = chan(by, bx)
    if (ry + rx) % 2 == 1:
        gmask = rpar == cpar      # green where (y+x) parity != red parity
    else:
        gmask = rpar != cpar
    gu = jnp.where(gmask, x, xmean)

    o_ref[0, :, :] = ru.astype(o_ref.dtype)
    o_ref[1, :, :] = gu.astype(o_ref.dtype)
    o_ref[2, :, :] = bu.astype(o_ref.dtype)


def raw_to_rgb(image, cfa, *, _tile_h=None):
    if image.ndim < 3 or image.shape[-3] != 1:
        raise ValueError(f"Input size must have a shape of [*, 1, H, W]. Got: {image.shape}.")
    H, W = image.shape[-2], image.shape[-1]
    if H % 2 == 1 or W % 2 == 1:
        raise ValueError(f"Input H&W must be evenly divisible by 2. Got: {image.shape}")
    if cfa not in _CFA_PARITY:
        raise ValueError(f"Unsupported CFA. Got: {cfa}.")
    if not jnp.issubdtype(image.dtype, jnp.floating):
        raise TypeError(f"Input must be a floating-point image in [0, 1]. Got: {image.dtype}.")

    orig_dtype = image.dtype
    work_dtype = orig_dtype if jnp.dtype(orig_dtype).itemsize <= 4 else jnp.float32
    itemsize = jnp.dtype(work_dtype).itemsize
    sub = 8 * (4 // itemsize)          # sublane tile: 8 for f32, 16 for bf16/f16

    lead = image.shape[:-3]
    x = image.reshape(-1, H, W).astype(work_dtype)
    B = x.shape[0]
    ry, rx, by, bx = _CFA_PARITY[cfa]

    # Pad H up to the sublane tile (replaces the old whole-image fallback).
    # Only the first pad row matters: it is the reflect neighbour (row H-2) of
    # the true bottom row; everything below is arbitrary and cropped after.
    Hp = ((H + sub - 1) // sub) * sub
    if Hp != H:
        filler = jnp.zeros((B, Hp - H - 1, W), x.dtype)
        x = jnp.concatenate([x, x[:, H - 2:H - 1, :], filler], axis=1)

    cap = _vmem_capacity_bytes()
    vmem_limit = int(min((cap * 3) // 4, 100 * 1024 * 1024))
    TH = _pick_tile_h(Hp, W, B, vmem_limit, sub) if _tile_h is None else int(_tile_h)
    if Hp % TH != 0 or TH % sub != 0:
        raise ValueError(f"Invalid tile height {TH} for padded H={Hp} (sublane tile {sub}).")
    HB = sub
    nt = Hp // TH

    # Halo-block index maps (block size HB along H; block index * HB = row):
    #  prev: the HB-row block whose last row sits just above the strip, or
    #        block 0 (its row 1 is the reflect of row -1) for the first strip.
    #  next: the HB-row block whose first row sits just below the strip, or
    #        the last block (its row HB-2 is the reflect of row Hp) for the
    #        last strip.
    def center_map(b, t):
        return (b, t, 0)

    def prev_map(b, t):
        return (b, jnp.where(t == 0, 0, t * (TH // HB) - 1), 0)

    def next_map(b, t):
        return (b, jnp.where(t == nt - 1, Hp // HB - 1, (t + 1) * (TH // HB)), 0)

    kernel = functools.partial(_raw_to_rgb_kernel, ry=ry, rx=rx, by=by, bx=bx)

    out = pl.pallas_call(
        kernel,
        out_shape=jax.ShapeDtypeStruct((B, 3, Hp, W), work_dtype),
        grid_spec=pltpu.PrefetchScalarGridSpec(
            num_scalar_prefetch=0,
            grid=(B, nt),
            in_specs=[
                pl.BlockSpec((None, TH, W), center_map),
                pl.BlockSpec((None, HB, W), prev_map),
                pl.BlockSpec((None, HB, W), next_map),
            ],
            out_specs=pl.BlockSpec((None, 3, TH, W), lambda b, t: (b, 0, t, 0)),
        ),
        compiler_params=pltpu.CompilerParams(
            dimension_semantics=("parallel", "parallel"),
            vmem_limit_bytes=vmem_limit,
        ),
        cost_estimate=pl.CostEstimate(
            flops=30 * B * Hp * W,
            transcendentals=0,
            bytes_accessed=(1 + 3) * itemsize * B * Hp * W,
        ),
    )(x, x, x)

    out = out[:, :, :H, :]
    if out.dtype != orig_dtype:
        out = out.astype(orig_dtype)
    return out.reshape(lead + (3, H, W))


class RawToRgb:
    """JAX/Pallas equivalent of the torch RawToRgb module."""

    def __init__(self, cfa):
        self.cfa = cfa

    def __call__(self, image):
        return raw_to_rgb(image, self.cfa)


# ----------------------------------------------------------------------------
# Pure NumPy reference following the torch implementation literally
# (replicate pad, align_corners bilinear upsample, crop, cross conv, reinject).
# ----------------------------------------------------------------------------
def _np_pad(a, pad, mode):
    l, r, t, b = pad
    return np.pad(a, ((0, 0), (0, 0), (t, b), (l, r)), mode=mode)


def _np_bilinear_align_corners(a, out_h, out_w):
    B, C, h, w = a.shape
    ys = np.arange(out_h) * (h - 1) / (out_h - 1)
    xs = np.arange(out_w) * (w - 1) / (out_w - 1)
    y0 = np.floor(ys).astype(int)
    y1 = np.minimum(y0 + 1, h - 1)
    wy = (ys - y0).reshape(1, 1, out_h, 1)
    x0 = np.floor(xs).astype(int)
    x1 = np.minimum(x0 + 1, w - 1)
    wx = (xs - x0).reshape(1, 1, 1, out_w)
    top = a[:, :, y0][:, :, :, x0] * (1 - wx) + a[:, :, y0][:, :, :, x1] * wx
    bot = a[:, :, y1][:, :, :, x0] * (1 - wx) + a[:, :, y1][:, :, :, x1] * wx
    return top * (1 - wy) + bot * wy


def _np_raw_to_rgb(image, cfa):
    imagesize = image.shape
    img = image.reshape(-1, 1, imagesize[-2], imagesize[-1]).astype(np.float64)
    H, W = img.shape[-2:]
    if cfa == CFA.BG:
        r = img[:, :, ::2, ::2]; b = img[:, :, 1::2, 1::2]
        rpad = (0, 1, 0, 1); bpad = (1, 0, 1, 0)
    elif cfa == CFA.GB:
        r = img[:, :, ::2, 1::2]; b = img[:, :, 1::2, ::2]
        rpad = (1, 0, 0, 1); bpad = (0, 1, 1, 0)
    elif cfa == CFA.RG:
        r = img[:, :, 1::2, 1::2]; b = img[:, :, ::2, ::2]
        rpad = (1, 0, 1, 0); bpad = (0, 1, 0, 1)
    else:  # GR
        r = img[:, :, 1::2, ::2]; b = img[:, :, ::2, 1::2]
        rpad = (0, 1, 1, 0); bpad = (1, 0, 0, 1)

    rpadded = _np_pad(r, rpad, "edge")
    bpadded = _np_pad(b, bpad, "edge")
    gpadded = _np_pad(img, (1, 1, 1, 1), "reflect")

    ru = _np_bilinear_align_corners(rpadded, H + 1, W + 1)
    bu = _np_bilinear_align_corners(bpadded, H + 1, W + 1)

    def crop(a, pad):
        l, r_, t, b_ = pad
        h, w = a.shape[-2:]
        return a[:, :, t:h - b_, l:w - r_]

    ru = crop(ru, rpad)
    bu = crop(bu, bpad)

    gu = 0.25 * (gpadded[:, :, :-2, 1:-1] + gpadded[:, :, 2:, 1:-1]
                 + gpadded[:, :, 1:-1, :-2] + gpadded[:, :, 1:-1, 2:])
    gu = gu.copy()
    if cfa == CFA.BG:
        gu[:, :, ::2, 1::2] = img[:, :, ::2, 1::2]
        gu[:, :, 1::2, ::2] = img[:, :, 1::2, ::2]
    elif cfa == CFA.GB:
        gu[:, :, ::2, ::2] = img[:, :, ::2, ::2]
        gu[:, :, 1::2, 1::2] = img[:, :, 1::2, 1::2]
    elif cfa == CFA.RG:
        gu[:, :, 1::2, ::2] = img[:, :, 1::2, ::2]
        gu[:, :, ::2, 1::2] = img[:, :, ::2, 1::2]
    else:
        gu[:, :, 1::2, 1::2] = img[:, :, 1::2, 1::2]
        gu[:, :, ::2, ::2] = img[:, :, ::2, ::2]

    ru = ru.reshape(imagesize)
    gu = gu.reshape(imagesize)
    bu = bu.reshape(imagesize)
    return np.concatenate([ru, gu, bu], axis=-3)


if __name__ == "__main__":
    key = jax.random.PRNGKey(0)
    k1, k2, k3 = jax.random.split(key, 3)
    ok = True

    # 1) Small image, single H-tile (exercises the reflect halo path).
    x_small = jax.random.uniform(k1, (2, 1, 16, 16), dtype=jnp.float32)
    for cfa in (CFA.BG, CFA.GB, CFA.RG, CFA.GR):
        out = jax.block_until_ready(RawToRgb(cfa)(x_small))
        assert out.shape == (2, 3, 16, 16), out.shape
        ref = _np_raw_to_rgb(np.asarray(x_small), cfa)
        if not np.allclose(np.asarray(out), ref, rtol=1e-5, atol=1e-5):
            ok = False
            print(f"[small] mismatch for cfa={cfa}: max err "
                  f"{np.abs(np.asarray(out) - ref).max()}")

    # 2) Forced H-tiling (4 strips of 8 rows): first/interior/last halo logic.
    x_tall = jax.random.uniform(k2, (2, 1, 32, 16), dtype=jnp.float32)
    for cfa in (CFA.BG, CFA.GB, CFA.RG, CFA.GR):
        out = jax.block_until_ready(raw_to_rgb(x_tall, cfa, _tile_h=8))
        assert out.shape == (2, 3, 32, 16), out.shape
        ref = _np_raw_to_rgb(np.asarray(x_tall), cfa)
        if not np.allclose(np.asarray(out), ref, rtol=1e-5, atol=1e-5):
            ok = False
            print(f"[tiled] mismatch for cfa={cfa}: max err "
                  f"{np.abs(np.asarray(out) - ref).max()}")

    # 3) H not a multiple of 8 (pad-and-crop path) and B == 1 (balance branch).
    x_pad = jax.random.uniform(k3, (1, 1, 12, 16), dtype=jnp.float32)
    for cfa in (CFA.BG, CFA.GR):
        out = jax.block_until_ready(raw_to_rgb(x_pad, cfa))
        assert out.shape == (1, 3, 12, 16), out.shape
        ref = _np_raw_to_rgb(np.asarray(x_pad), cfa)
        if not np.allclose(np.asarray(out), ref, rtol=1e-5, atol=1e-5):
            ok = False
            print(f"[padded] mismatch for cfa={cfa}: max err "
                  f"{np.abs(np.asarray(out) - ref).max()}")

    if ok:
        print("KERNEL_OK")
</pallas_src>

<mosaic_0001>
module attributes {stable_mosaic.version = 11 : i64} {
  func.func @_raw_to_rgb_kernel(%arg0: i32, %arg1: i32, %arg2: memref<1x16x16xf32, #tpu.memory_space<vmem>>, %arg3: memref<1x8x16xf32, #tpu.memory_space<vmem>>, %arg4: memref<1x8x16xf32, #tpu.memory_space<vmem>>, %arg5: memref<1x3x16x16xf32, #tpu.memory_space<vmem>>) attributes {dimension_semantics = [#tpu.dimension_semantics<parallel>, #tpu.dimension_semantics<parallel>], iteration_bounds = array<i64: 2, 1>, scalar_prefetch = 0 : i64, scratch_operands = 0 : i64, tpu.core_type = #tpu.core_type<tc>, window_params = [{transform_indices = @transform_0, window_bounds = array<i64: 1, 16, 16>}, {transform_indices = @transform_1, window_bounds = array<i64: 1, 8, 16>}, {transform_indices = @transform_2, window_bounds = array<i64: 1, 8, 16>}, {transform_indices = @transform_3, window_bounds = array<i64: 1, 3, 16, 16>}]} {
    %c0 = arith.constant 0 : index
    %c0_0 = arith.constant 0 : index
    %c0_1 = arith.constant 0 : index
    %0 = vector.load %arg2[%c0, %c0_0, %c0_1] : memref<1x16x16xf32, #tpu.memory_space<vmem>>, vector<1x16x16xf32>
    %1 = vector.shape_cast %0 : vector<1x16x16xf32> to vector<16x16xf32>
    %c0_2 = arith.constant 0 : index
    %c0_3 = arith.constant 0 : index
    %c0_4 = arith.constant 0 : index
    %2 = vector.load %arg3[%c0_2, %c0_3, %c0_4] : memref<1x8x16xf32, #tpu.memory_space<vmem>>, vector<1x8x16xf32>
    %3 = vector.shape_cast %2 : vector<1x8x16xf32> to vector<8x16xf32>
    %c0_5 = arith.constant 0 : index
    %c0_6 = arith.constant 0 : index
    %c0_7 = arith.constant 0 : index
    %4 = vector.load %arg4[%c0_5, %c0_6, %c0_7] : memref<1x8x16xf32, #tpu.memory_space<vmem>>, vector<1x8x16xf32>
    %5 = vector.shape_cast %4 : vector<1x8x16xf32> to vector<8x16xf32>
    %c0_i32 = arith.constant 0 : i32
    %6 = arith.cmpi eq, %arg1, %c0_i32 : i32
    %7 = vector.extract_strided_slice %3 {offsets = [1, 0], sizes = [1, 16], strides = [1, 1]} : vector<8x16xf32> to vector<1x16xf32>
    %8 = vector.extract_strided_slice %3 {offsets = [7, 0], sizes = [1, 16], strides = [1, 1]} : vector<8x16xf32> to vector<1x16xf32>
    %9 = arith.select %6, %7, %8 : vector<1x16xf32>
    %c0_i32_8 = arith.constant 0 : i32
    %10 = arith.cmpi eq, %arg1, %c0_i32_8 : i32
    %11 = vector.extract_strided_slice %5 {offsets = [6, 0], sizes = [1, 16], strides = [1, 1]} : vector<8x16xf32> to vector<1x16xf32>
    %12 = vector.extract_strided_slice %5 {offsets = [0, 0], sizes = [1, 16], strides = [1, 1]} : vector<8x16xf32> to vector<1x16xf32>
    %13 = arith.select %10, %11, %12 : vector<1x16xf32>
    %14 = tpu.iota {dimensions = array<i32: 1>} : vector<1x16xi32>
    %15 = tpu.iota {dimensions = array<i32: 0>} : vector<16x1xi32>
    %c0_i32_9 = arith.constant 0 : i32
    %16 = vector.broadcast %c0_i32_9 : i32 to vector<1x16xi32>
    %17 = arith.cmpi eq, %14, %16 : vector<1x16xi32>
    %18 = vector.extract_strided_slice %1 {offsets = [0, 1], sizes = [16, 1], strides = [1, 1]} : vector<16x16xf32> to vector<16x1xf32>
    %c1_i32 = arith.constant 1 : i32
    %19 = tpu.dynamic_rotate %1 by %c1_i32 dim 1 : vector<16x16xf32>, i32 -> vector<16x16xf32>
    %20 = vector.shape_cast %17 : vector<1x16xi1> to vector<1x16xi1>
    %21 = vector.broadcast %20 : vector<1x16xi1> to vector<16x16xi1>
    %22 = vector.shape_cast %18 : vector<16x1xf32> to vector<16x1xf32>
    %23 = vector.broadcast %22 : vector<16x1xf32> to vector<16x16xf32>
    %24 = arith.select %21, %23, %19 : vector<16x16xi1>, vector<16x16xf32>
    %c15_i32 = arith.constant 15 : i32
    %25 = vector.broadcast %c15_i32 : i32 to vector<1x16xi32>
    %26 = arith.cmpi eq, %14, %25 : vector<1x16xi32>
    %27 = vector.extract_strided_slice %1 {offsets = [0, 14], sizes = [16, 1], strides = [1, 1]} : vector<16x16xf32> to vector<16x1xf32>
    %c15_i32_10 = arith.constant 15 : i32
    %28 = tpu.dynamic_rotate %1 by %c15_i32_10 dim 1 : vector<16x16xf32>, i32 -> vector<16x16xf32>
    %29 = vector.shape_cast %26 : vector<1x16xi1> to vector<1x16xi1>
    %30 = vector.broadcast %29 : vector<1x16xi1> to vector<16x16xi1>
    %31 = vector.shape_cast %27 : vector<16x1xf32> to vector<16x1xf32>
    %32 = vector.broadcast %31 : vector<16x1xf32> to vector<16x16xf32>
    %33 = arith.select %30, %32, %28 : vector<16x16xi1>, vector<16x16xf32>
    %34 = arith.addf %24, %33 : vector<16x16xf32>
    %c0_i32_11 = arith.constant 0 : i32
    %35 = vector.broadcast %c0_i32_11 : i32 to vector<1x16xi32>
    %36 = arith.cmpi eq, %14, %35 : vector<1x16xi32>
    %37 = vector.extract_strided_slice %9 {offsets = [0, 1], sizes = [1, 1], strides = [1, 1]} : vector<1x16xf32> to vector<1x1xf32>
    %c1_i32_12 = arith.constant 1 : i32
    %38 = tpu.dynamic_rotate %9 by %c1_i32_12 dim 1 : vector<1x16xf32>, i32 -> vector<1x16xf32>
    %39 = vector.shape_cast %37 : vector<1x1xf32> to vector<1x1xf32>
    %40 = vector.broadcast %39 : vector<1x1xf32> to vector<1x16xf32>
    %41 = arith.select %36, %40, %38 : vector<1x16xi1>, vector<1x16xf32>
    %c15_i32_13 = arith.constant 15 : i32
    %42 = vector.broadcast %c15_i32_13 : i32 to vector<1x16xi32>
    %43 = arith.cmpi eq, %14, %42 : vector<1x16xi32>
    %44 = vector.extract_strided_slice %9 {offsets = [0, 14], sizes = [1, 1], strides = [1, 1]} : vector<1x16xf32> to vector<1x1xf32>
    %c15_i32_14 = arith.constant 15 : i32
    %45 = tpu.dynamic_rotate %9 by %c15_i32_14 dim 1 : vector<1x16xf32>, i32 -> vector<1x16xf32>
    %46 = vector.shape_cast %44 : vector<1x1xf32> to vector<1x1xf32>
    %47 = vector.broadcast %46 : vector<1x1xf32> to vector<1x16xf32>
    %48 = arith.select %43, %47, %45 : vector<1x16xi1>, vector<1x16xf32>
    %49 = arith.addf %41, %48 : vector<1x16xf32>
    %c0_i32_15 = arith.constant 0 : i32
    %50 = vector.broadcast %c0_i32_15 : i32 to vector<1x16xi32>
    %51 = arith.cmpi eq, %14, %50 : vector<1x16xi32>
    %52 = vector.extract_strided_slice %13 {offsets = [0, 1], sizes = [1, 1], strides = [1, 1]} : vector<1x16xf32> to vector<1x1xf32>
    %c1_i32_16 = arith.constant 1 : i32
    %53 = tpu.dynamic_rotate %13 by %c1_i32_16 dim 1 : vector<1x16xf32>, i32 -> vector<1x16xf32>
    %54 = vector.shape_cast %52 : vector<1x1xf32> to vector<1x1xf32>
    %55 = vector.broadcast %54 : vector<1x1xf32> to vector<1x16xf32>
    %56 = arith.select %51, %55, %53 : vector<1x16xi1>, vector<1x16xf32>
    %c15_i32_17 = arith.constant 15 : i32
    %57 = vector.broadcast %c15_i32_17 : i32 to vector<1x16xi32>
    %58 = arith.cmpi eq, %14, %57 : vector<1x16xi32>
    %59 = vector.extract_strided_slice %13 {offsets = [0, 14], sizes = [1, 1], strides = [1, 1]} : vector<1x16xf32> to vector<1x1xf32>
    %c15_i32_18 = arith.constant 15 : i32
    %60 = tpu.dynamic_rotate %13 by %c15_i32_18 dim 1 : vector<1x16xf32>, i32 -> vector<1x16xf32>
    %61 = vector.shape_cast %59 : vector<1x1xf32> to vector<1x1xf32>
    %62 = vector.broadcast %61 : vector<1x1xf32> to vector<1x16xf32>
    %63 = arith.select %58, %62, %60 : vector<1x16xi1>, vector<1x16xf32>
    %64 = arith.addf %56, %63 : vector<1x16xf32>
    %c0_i32_19 = arith.constant 0 : i32
    %65 = vector.broadcast %c0_i32_19 : i32 to vector<16x1xi32>
    %66 = arith.cmpi eq, %15, %65 : vector<16x1xi32>
    %c15_i32_20 = arith.constant 15 : i32
    %67 = vector.broadcast %c15_i32_20 : i32 to vector<16x1xi32>
    %68 = arith.cmpi eq, %15, %67 : vector<16x1xi32>
    %c1_i32_21 = arith.constant 1 : i32
    %69 = tpu.dynamic_rotate %1 by %c1_i32_21 dim 0 : vector<16x16xf32>, i32 -> vector<16x16xf32>
    %c15_i32_22 = arith.constant 15 : i32
    %70 = tpu.dynamic_rotate %1 by %c15_i32_22 dim 0 : vector<16x16xf32>, i32 -> vector<16x16xf32>
    %71 = arith.addf %69, %70 : vector<16x16xf32>
    %72 = vector.extract_strided_slice %1 {offsets = [1, 0], sizes = [1, 16], strides = [1, 1]} : vector<16x16xf32> to vector<1x16xf32>
    %73 = arith.addf %9, %72 : vector<1x16xf32>
    %74 = vector.shape_cast %66 : vector<16x1xi1> to vector<16x1xi1>
    %75 = vector.broadcast %74 : vector<16x1xi1> to vector<16x16xi1>
    %76 = vector.shape_cast %73 : vector<1x16xf32> to vector<1x16xf32>
    %77 = vector.broadcast %76 : vector<1x16xf32> to vector<16x16xf32>
    %78 = arith.select %75, %77, %71 : vector<16x16xi1>, vector<16x16xf32>
    %79 = vector.extract_strided_slice %1 {offsets = [14, 0], sizes = [1, 16], strides = [1, 1]} : vector<16x16xf32> to vector<1x16xf32>
    %80 = arith.addf %13, %79 : vector<1x16xf32>
    %81 = vector.shape_cast %68 : vector<16x1xi1> to vector<16x1xi1>
    %82 = vector.broadcast %81 : vector<16x1xi1> to vector<16x16xi1>
    %83 = vector.shape_cast %80 : vector<1x16xf32> to vector<1x16xf32>
    %84 = vector.broadcast %83 : vector<1x16xf32> to vector<16x16xf32>
    %85 = arith.select %82, %84, %78 : vector<16x16xi1>, vector<16x16xf32>
    %c1_i32_23 = arith.constant 1 : i32
    %86 = tpu.dynamic_rotate %34 by %c1_i32_23 dim 0 : vector<16x16xf32>, i32 -> vector<16x16xf32>
    %c15_i32_24 = arith.constant 15 : i32
    %87 = tpu.dynamic_rotate %34 by %c15_i32_24 dim 0 : vector<16x16xf32>, i32 -> vector<16x16xf32>
    %88 = arith.addf %86, %87 : vector<16x16xf32>
    %89 = vector.extract_strided_slice %34 {offsets = [1, 0], sizes = [1, 16], strides = [1, 1]} : vector<16x16xf32> to vector<1x16xf32>
    %90 = arith.addf %49, %89 : vector<1x16xf32>
    %91 = vector.shape_cast %66 : vector<16x1xi1> to vector<16x1xi1>
    %92 = vector.broadcast %91 : vector<16x1xi1> to vector<16x16xi1>
    %93 = vector.shape_cast %90 : vector<1x16xf32> to vector<1x16xf32>
    %94 = vector.broadcast %93 : vector<1x16xf32> to vector<16x16xf32>
    %95 = arith.select %92, %94, %88 : vector<16x16xi1>, vector<16x16xf32>
    %96 = vector.extract_strided_slice %34 {offsets = [14, 0], sizes = [1, 16], strides = [1, 1]} : vector<16x16xf32> to vector<1x16xf32>
    %97 = arith.addf %64, %96 : vector<1x16xf32>
    %98 = vector.shape_cast %68 : vector<16x1xi1> to vector<16x1xi1>
    %99 = vector.broadcast %98 : vector<16x1xi1> to vector<16x16xi1>
    %100 = vector.shape_cast %97 : vector<1x16xf32> to vector<1x16xf32>
    %101 = vector.broadcast %100 : vector<1x16xf32> to vector<16x16xf32>
    %102 = arith.select %99, %101, %95 : vector<16x16xi1>, vector<16x16xf32>
    %cst = arith.constant 5.000000e-01 : f32
    %103 = vector.broadcast %cst : f32 to vector<16x16xf32>
    %104 = arith.mulf %103, %34 : vector<16x16xf32>
    %cst_25 = arith.constant 5.000000e-01 : f32
    %105 = vector.broadcast %cst_25 : f32 to vector<16x16xf32>
    %106 = arith.mulf %105, %85 : vector<16x16xf32>
    %cst_26 = arith.constant 2.500000e-01 : f32
    %107 = vector.broadcast %cst_26 : f32 to vector<16x16xf32>
    %108 = arith.mulf %107, %102 : vector<16x16xf32>
    %109 = arith.addf %34, %85 : vector<16x16xf32>
    %cst_27 = arith.constant 2.500000e-01 : f32
    %110 = vector.broadcast %cst_27 : f32 to vector<16x16xf32>
    %111 = arith.mulf %110, %109 : vector<16x16xf32>
    %c1_i32_28 = arith.constant 1 : i32
    %112 = vector.broadcast %c1_i32_28 : i32 to vector<16x1xi32>
    %113 = arith.andi %15, %112 : vector<16x1xi32>
    %c1_i32_29 = arith.constant 1 : i32
    %114 = vector.broadcast %c1_i32_29 : i32 to vector<1x16xi32>
    %115 = arith.andi %14, %114 : vector<1x16xi32>
    %c0_i32_30 = arith.constant 0 : i32
    %116 = vector.broadcast %c0_i32_30 : i32 to vector<16x1xi32>
    %117 = arith.cmpi eq, %113, %116 : vector<16x1xi32>
    %c0_i32_31 = arith.constant 0 : i32
    %118 = vector.broadcast %c0_i32_31 : i32 to vector<1x16xi32>
    %119 = arith.cmpi eq, %115, %118 : vector<1x16xi32>
    %120 = vector.shape_cast %119 : vector<1x16xi1> to vector<1x16xi1>
    %121 = vector.broadcast %120 : vector<1x16xi1> to vector<16x16xi1>
    %122 = arith.select %121, %1, %104 : vector<16x16xi1>, vector<16x16xf32>
    %123 = vector.shape_cast %119 : vector<1x16xi1> to vector<1x16xi1>
    %124 = vector.broadcast %123 : vector<1x16xi1> to vector<16x16xi1>
    %125 = arith.select %124, %106, %108 : vector<16x16xi1>, vector<16x16xf32>
    %126 = vector.shape_cast %117 : vector<16x1xi1> to vector<16x1xi1>
    %127 = vector.broadcast %126 : vector<16x1xi1> to vector<16x16xi1>
    %128 = arith.select %127, %122, %125 : vector<16x16xi1>, vector<16x16xf32>
    %c1_i32_32 = arith.constant 1 : i32
    %129 = vector.broadcast %c1_i32_32 : i32 to vector<16x1xi32>
    %130 = arith.cmpi eq, %113, %129 : vector<16x1xi32>
    %c1_i32_33 = arith.constant 1 : i32
    %131 = vector.broadcast %c1_i32_33 : i32 to vector<1x16xi32>
    %132 = arith.cmpi eq, %115, %131 : vector<1x16xi32>
    %133 = vector.shape_cast %132 : vector<1x16xi1> to vector<1x16xi1>
    %134 = vector.broadcast %133 : vector<1x16xi1> to vector<16x16xi1>
    %135 = arith.select %134, %1, %104 : vector<16x16xi1>, vector<16x16xf32>
    %136 = vector.shape_cast %132 : vector<1x16xi1> to vector<1x16xi1>
    %137 = vector.broadcast %136 : vector<1x16xi1> to vector<16x16xi1>
    %138 = arith.select %137, %106, %108 : vector<16x16xi1>, vector<16x16xf32>
    %139 = vector.shape_cast %130 : vector<16x1xi1> to vector<16x1xi1>
    %140 = vector.broadcast %139 : vector<16x1xi1> to vector<16x16xi1>
    %141 = arith.select %140, %135, %138 : vector<16x16xi1>, vector<16x16xf32>
    %142 = vector.broadcast %113 : vector<16x1xi32> to vector<16x16xi32>
    %143 = vector.broadcast %115 : vector<1x16xi32> to vector<16x16xi32>
    %144 = arith.cmpi ne, %142, %143 : vector<16x16xi32>
    %145 = arith.select %144, %1, %111 : vector<16x16xi1>, vector<16x16xf32>
    %c0_34 = arith.constant 0 : index
    %c0_35 = arith.constant 0 : index
    %c0_36 = arith.constant 0 : index
    %c0_37 = arith.constant 0 : index
    %146 = vector.load %arg5[%c0_34, %c0_35, %c0_36, %c0_37] : memref<1x3x16x16xf32, #tpu.memory_space<vmem>>, vector<1x1x16x16xf32>
    %147 = vector.shape_cast %146 : vector<1x1x16x16xf32> to vector<16x16xf32>
    %148 = vector.shape_cast %128 : vector<16x16xf32> to vector<1x1x16x16xf32>
    tpu.vector_store %arg5[%c0_34, %c0_35, %c0_36, %c0_37], %148 {strides = array<i32>} : memref<1x3x16x16xf32, #tpu.memory_space<vmem>>, vector<1x1x16x16xf32>,
    %c0_38 = arith.constant 0 : index
    %c1 = arith.constant 1 : index
    %c0_39 = arith.constant 0 : index
    %c0_40 = arith.constant 0 : index
    %149 = vector.load %arg5[%c0_38, %c1, %c0_39, %c0_40] : memref<1x3x16x16xf32, #tpu.memory_space<vmem>>, vector<1x1x16x16xf32>
    %150 = vector.shape_cast %149 : vector<1x1x16x16xf32> to vector<16x16xf32>
    %151 = vector.shape_cast %145 : vector<16x16xf32> to vector<1x1x16x16xf32>
    tpu.vector_store %arg5[%c0_38, %c1, %c0_39, %c0_40], %151 {strides = array<i32>} : memref<1x3x16x16xf32, #tpu.memory_space<vmem>>, vector<1x1x16x16xf32>,
    %c0_41 = arith.constant 0 : index
    %c2 = arith.constant 2 : index
    %c0_42 = arith.constant 0 : index
    %c0_43 = arith.constant 0 : index
    %152 = vector.load %arg5[%c0_41, %c2, %c0_42, %c0_43] : memref<1x3x16x16xf32, #tpu.memory_space<vmem>>, vector<1x1x16x16xf32>
    %153 = vector.shape_cast %152 : vector<1x1x16x16xf32> to vector<16x16xf32>
    %154 = vector.shape_cast %141 : vector<16x16xf32> to vector<1x1x16x16xf32>
    tpu.vector_store %arg5[%c0_41, %c2, %c0_42, %c0_43], %154 {strides = array<i32>} : memref<1x3x16x16xf32, #tpu.memory_space<vmem>>, vector<1x1x16x16xf32>,
    return
  }
  func.func @transform_0(%arg0: i32, %arg1: i32) -> (i32, i32, i32) {
    %c0_i32 = arith.constant 0 : i32
    %c0_i32_0 = arith.constant 0 : i32
    return %arg0, %arg1, %c0_i32 : i32, i32, i32
  }
  func.func @transform_1(%arg0: i32, %arg1: i32) -> (i32, i32, i32) {
    %c0_i32 = arith.constant 0 : i32
    %0 = arith.cmpi eq, %arg1, %c0_i32 : i32
    %c2_i32 = arith.constant 2 : i32
    %1 = arith.muli %arg1, %c2_i32 : i32
    %c1_i32 = arith.constant 1 : i32
    %2 = arith.subi %1, %c1_i32 : i32
    %c0_i32_0 = arith.constant 0 : i32
    %3 = arith.select %0, %c0_i32_0, %2 : i32
    %c0_i32_1 = arith.constant 0 : i32
    %c0_i32_2 = arith.constant 0 : i32
    return %arg0, %3, %c0_i32_1 : i32, i32, i32
  }
  func.func @transform_2(%arg0: i32, %arg1: i32) -> (i32, i32, i32) {
    %c0_i32 = arith.constant 0 : i32
    %0 = arith.cmpi eq, %arg1, %c0_i32 : i32
    %c1_i32 = arith.constant 1 : i32
    %1 = arith.addi %arg1, %c1_i32 : i32
    %c2_i32 = arith.constant 2 : i32
    %2 = arith.muli %1, %c2_i32 : i32
    %c1_i32_0 = arith.constant 1 : i32
    %3 = arith.select %0, %c1_i32_0, %2 : i32
    %c0_i32_1 = arith.constant 0 : i32
    %c0_i32_2 = arith.constant 0 : i32
    return %arg0, %3, %c0_i32_1 : i32, i32, i32
  }
  func.func @transform_3(%arg0: i32, %arg1: i32) -> (i32, i32, i32, i32) {
    %c0_i32 = arith.constant 0 : i32
    %c0_i32_0 = arith.constant 0 : i32
    %c0_i32_1 = arith.constant 0 : i32
    return %arg0, %c0_i32, %arg1, %c0_i32_0 : i32, i32, i32, i32
  }
}

</mosaic_0001>

<bundles_post_ra>
// kernel: tpu_custom_call.1
= control target key start
LH: loop header
LB: loop body
LE: loop exit
PB: predicated region body
PF: predicated region fallthrough
CT: control target
= control target key end

     0   :  { %s1400_s0 = inlined_call_operand.hbm [shape: f32[2,16,16], index: 0, kind: input, shape index: {}]   ;;  %s1401_s1 = inlined_call_operand.hbm [shape: f32[2,16,16], index: 1, kind: input, shape index: {}]   ;;  %s1402_s2 = inlined_call_operand.hbm [shape: f32[2,16,16], index: 2, kind: input, shape index: {}]   ;;  %s1403_s3 = inlined_call_operand.hbm [shape: f32[2,3,16,16], index: 3, kind: output, shape index: {}]  }
   0x1   :  { %1407 = sst [smem:[#allocation15_spill]] %s1401_s1 }
   0x2   :  { %1408 = sst [smem:[#allocation16_spill]] %s1402_s2 }
   0x3   :  { %8 = vsyncpa [#allocation3], 0 }
   0x4   :  { %10 = vsyncpa [#allocation3 + $0x1], 0 }
   0x5   :  { %11 = vsyncpa [#allocation6], 0 }
   0x6   :  { %13 = vsyncpa [#allocation6 + $0x1], 0 }
   0x7   :  { %14 = vsyncpa [#allocation4], 0 }
   0x8   :  { %16 = vsyncpa [#allocation4 + $0x1], 0  ;;  %s1044_s12 = smov 0   ;;  %s1046_s13 = smov 0  }
   0x9   :  { %s1048_s14 = smov 0   ;;  %s1050_s15 = smov 0  }
   0xa   :  { %s1052_s16 = smov 0   ;;  %s1054_s17 = smov 0  }
   0xb LB: > { %1409 = sst [smem:[#allocation12_spill]] %s1005_s16  ;;  %s1075_s18 = sadd.s32 4294967295, %s1009_s17   ;;  %s1009_s17 = sphi %s1054_s17, %s22_s17   ;;  %s1005_s16 = sphi %s1052_s16, %s1424_s16   ;;  %s1001_s15 = sphi %s1050_s15, %s1423_s15   ;;  %s997_s14 = sphi %s1048_s14, %s1427_s14   ;;  %s993_s13 = sphi %s1046_s13, %s1426_s13   ;;  %s989_s12 = sphi %s1044_s12, %s1425_s12  }
   0xc   : > { %s723_s19 = sadd.s32 4294967294, %s1009_s17   ;;  %s34_s20 = sadd.s32 1, %s1005_s16 }
   0xd   : > { %s43_s21 = sadd.s32 1, %s997_s14  ;;  %p36_p0 = scmp.ge.s32.totalorder %s34_s20, 2 }
   0xe   : > { %p50_p1 = scmp.ne.s32.totalorder %s997_s14, %s993_s13  ;;  %p51_p2 = scmp.eq.s32.totalorder %s1009_s17, 0 }
   0xf   : > { %p56_p3 = scmp.ne.s32.totalorder %s993_s13, %s989_s12  ;;  %s1429_s20 = smov (%p36_p0, %s34_s20), 0 }
  0x10   : > { %1410 = sst [smem:[#allocation13_spill]] %s1429_s20  ;;  %p1087_p4 = por %p51_p2, %p50_p1 }
  0x11   : > { %p57_p5 = scmp.eq.s32.totalorder %s1075_s18, 0  ;;  %s38_s23 = ssub.s32 %s1005_s16, %s1429_s20 }
  0x12   : > { %p154_p6 = scmp.eq.s32.totalorder %s1075_s18, 1  ;;  %p41_p7 = scmp.eq.s32.totalorder %s38_s23, 0 }
  0x13   : > { %p1095_p8 = por %p57_p5, %p56_p3  ;;  %p160_p10 = scmp.eq.s32.totalorder %s723_s19, 1 }
  0x14   : > { %p1099_p9 = por %p154_p6, %p50_p1  ;;  %p725_p12 = scmp.ge.s32.totalorder %s1009_s17, 2 }
  0x15   : > { %s1104_s26 = scalar_select %p41_p7, %s997_s14, %s43_s21  }
  0x16   : > { %p1106_p11 = por %p160_p10, %p56_p3  ;;  %p775_p13 = scmp.lt.s32.totalorder %s1009_s17, 2 }
  0x17   : > { %1414 = sst [smem:[#allocation14_spill]] %s1104_s26  ;;  %s1113_s28 = sand.u32 1, %s997_s14  }
  0x18   : > { %s1116_s29 = sshll.u32 %s1005_s16, 8  ;;  %s203_s30 = sand.u32 1, %s1009_s17  }
  0x19   : > { %p1125_p0 = pnand %p775_p13, %p1087_p4  ;;  %s1404_s8 = sshll.u32 %s1113_s28, 3 }
  0x1a   : > { %s1417_s1 = sld [smem:[#allocation15_spill]]  ;;  %s207_s19 = scalar_lea.vmem [#allocation5], %s1404_s8 }
  0x1b   : > { %s220_s21 = sshll.u32 %s207_s19, 4  ;;  %s1136_s23 = scalar_lea.sflag [#allocation6], %s203_s30  ;;  %s221_s21 = int_to_ptr.vmem [resolvable:$true] %s220_s21 }
  0x1c   : > { %p843_p1 = pneg %p1125_p0  ;;  %s854_s22 = scalar_lea.vmem %s221_s21, 128 }
  0x1d   : > { %p855_p2 = scmp.ne.s32.totalorder %s221_s21, %s854_s22  ;;  %s1011_s4 = smov [#allocation5]  }
  0x1e   : > { %s859_s5 = sshll.u32 %s1011_s4, 4  ;;  %s860_s5 = int_to_ptr.vmem [resolvable:$false] %s859_s5 }
  0x1f   : > { %p857_p3 = pnand %p855_p2, %p843_p1  ;;  %s861_s6 = scalar_lea.vmem %s860_s5, 256 }
  0x20   : > { %s218_s11 = scalar_lea.hbm %s1417_s1, %s1116_s29  ;;  %p862_p5 = scmp.lt.s32.totalorder %s221_s21, %s860_s5 }
  0x21   : > { %p858_p4 = pneg %p857_p3  ;;  %p863_p6 = scmp.lt.s32.totalorder %s861_s6, %s854_s22 }
  0x23   : > { %p864_p7 = por %p863_p6, %p862_p5 }
  0x25   : > { %p865_p10 = pnand %p864_p7, %p858_p4 }
  0x27   : > { %868 = shalt.err (!%p865_p10)
}
  0x28   : > { %767 = dma.hbm_to_vmem [thread:$0]  (!%p1125_p0), %s218_s11, 128, %s221_s21, %s1136_s23  }
  0x29   : > { %p735_p13 = scmp.ge.s32.totalorder %s1009_s17, 1  ;;  %p249_p2 = scmp.lt.s32.totalorder %s1009_s17, 3 }
  0x2a   : > { %s726_s6 = sshll.u32 %s1113_s28, 4  ;;  %s749_s19 = sadd.s32 128, %s1116_s29 }
  0x2b   : > { %p1148_p3 = pnand %p735_p13, %p249_p2  ;;  %s184_s9 = scalar_lea.vmem [#allocation2], %s726_s6 }
  0x2c   : > { %s193_s10 = sshll.u32 %s184_s9, 4  ;;  %s1419_s2 = sld [smem:[#allocation16_spill]]  ;;  %s194_s10 = int_to_ptr.vmem [resolvable:$true] %s193_s10 }
  0x2d   : > { %s181_s8 = scalar_lea.sflag [#allocation3], %s1113_s28  ;;  %s882_s1 = scalar_lea.vmem %s194_s10, 256 }
  0x2e   : > { %p883_p4 = scmp.ne.s32.totalorder %s194_s10, %s882_s1  ;;  %s1012_s11 = smov [#allocation2]  }
  0x2f   : > { %s887_s21 = sshll.u32 %s1012_s11, 4  ;;  %s888_s21 = int_to_ptr.vmem [resolvable:$false] %s887_s21 }
  0x30   : > { %p885_p5 = pnand %p883_p4, %p843_p1  ;;  %s889_s20 = scalar_lea.vmem %s888_s21, 512 }
  0x31   : > { %p890_p7 = scmp.lt.s32.totalorder %s194_s10, %s888_s21  ;;  %p891_p10 = scmp.lt.s32.totalorder %s889_s20, %s882_s1 }
  0x32   : > { %s1157_s5 = scalar_lea.hbm %s1419_s2, %s749_s19  ;;  %p886_p6 = pneg %p885_p5 }
  0x33   : > { %p892_p13 = por %p891_p10, %p890_p7 }
  0x35   : > { %p893_p2 = pnand %p892_p13, %p886_p6 }
  0x37   : > { %896 = shalt.err (!%p893_p2)
}
  0x38   : > { %s1013_s6 = smov 128   ;;  %s1014_s9 = smov 8  }
  0x39   : > { %s1420_s4 = scalar_lea.hbm %s1400_s0, %s1116_s29  ;;  %s1421_s11 = sshll.u32 %s1113_s28, 3 }
  0x3a   : > { %764 = dma.hbm_to_vmem [thread:$0]  (!%p1125_p0), %s1420_s4, 256, %s194_s10, %s181_s8, %s1013_s6, %s1013_s6, %s1014_s9  }
  0x3b   : > { %s231_s2 = scalar_lea.vmem [#allocation7], %s1421_s11  ;;  %s1015_s20 = smov [#allocation7]  }
  0x3c   : > { %s244_s16 = sshll.u32 %s231_s2, 4  ;;  %s915_s21 = sshll.u32 %s1015_s20, 4  ;;  %s245_s16 = int_to_ptr.vmem [resolvable:$true] %s244_s16  ;;  %s916_s21 = int_to_ptr.vmem [resolvable:$false] %s915_s21 }
  0x3d   : > { %s910_s1 = scalar_lea.vmem %s245_s16, 128  ;;  %s917_s26 = scalar_lea.vmem %s916_s21, 256 }
  0x3e   : > { %p911_p4 = scmp.ne.s32.totalorder %s245_s16, %s910_s1  ;;  %p918_p7 = scmp.lt.s32.totalorder %s245_s16, %s916_s21 }
  0x3f   : > { %p919_p10 = scmp.lt.s32.totalorder %s917_s26, %s910_s1 }
  0x40   : > { %p913_p5 = pnand %p911_p4, %p843_p1 }
  0x41   : > { %p920_p13 = por %p919_p10, %p918_p7 }
  0x42   : > { %p914_p6 = pneg %p913_p5 }
  0x44   : > { %p921_p2 = pnand %p920_p13, %p914_p6 }
  0x46   : > { %924 = shalt.err (!%p921_p2)
}
  0x47   : > { %770 = dma.hbm_to_vmem [thread:$0]  (!%p1125_p0), %s1157_s5, 128, %s245_s16, %s1136_s23  }
  0x48   : > { %253 = sbr.rel (%p1148_p3) target bundleno = 477 (0x1dd), region = 32  ;;  %s1182_s2 = sand.u32 (!%p1148_p3), 1, %s993_s13  }
  0x49   : > { %s736_s28 = sshll.u32 (!%p1148_p3), %s1182_s2, 4  ;;  %s256_s29 = scalar_lea.sflag (!%p1148_p3), [#allocation3], %s1182_s2 }
  0x4a   : > { %s259_s26 = scalar_lea.vmem (!%p1148_p3), [#allocation2], %s736_s28 }
  0x4d   : > { %976 = dma.done.wait (%p1095_p8), %s256_s29, 256  }
  0x4e   : > { %978 = vsyncadd (%p1095_p8), %s256_s29, 4294967040  ;;  %s264_s16 = sand.u32 1, %s1075_s18   ;;  %s737_s7 = sshll.u32 %s1182_s2, 3 }
  0x4f   : > { %s265_s8 = scalar_lea.sflag [#allocation6], %s264_s16  ;;  %s268_s23 = scalar_lea.vmem [#allocation5], %s737_s7 }
  0x50   : > { %980 = dma.done.wait (%p1095_p8), %s265_s8, 256  }
  0x51   : > { %982 = vsyncadd (%p1095_p8), %s265_s8, 4294967040  ;;  %v1196_v0 = vld [vmem:[%s268_s23] sm:$0xff]  ;;  %s277_s30 = scalar_lea.vmem [#allocation7], %s737_s7  ;;  %v1016_v3 = vmov 1   ;;  %s1017_s18 = smov 16   ;;  %v1204_v5 = vld [vmem:[%s259_s26 + $0x8] sm:$0xff]  ;;  %v336_v31 = vlaneseq }
  0x52   : > { %v1198_v1 = vld [vmem:[%s259_s26] sm:$0xff]  ;;  %v1200_v2 = vld [vmem:[%s277_s30] sm:$0xff]  ;;  %834 = vset.pattern.permute.xlu1 %v1016_v3  ;;  %v399_v4 = vrot.slane %v1196_v0, 1  ;;  %v1018_v7 = vmov 14   ;;  %vm342_vm0 = vcmask 1047680   ;;  %s1019_s24 = smov 113  }
  0x53   : > { %343 = vrot.lane.b32.xlu1 %v1198_v1, %s1017_s18  ;;  %v427_v6 = vrot.slane %v1200_v2, 6  ;;  %836 = vset.pattern.permute.xlu0 %v1018_v7  ;;  %s1020_s10 = smov 127   ;;  %v1228_v32 = vshrl.u32 %v336_v31, 7  ;;  %v459_v35 = vrot.slane %v1204_v5, 7  ;;  %v464_v36 = vrot.slane %v1204_v5, 1  ;;  %s751_s5 = smul.u32 48, %s1182_s2 }
  0x54   : > { %401 = vrot.lane.b32.xlu0 %v399_v4, %s1017_s18  ;;  %v458_v37 = vrot.slane %v1198_v1, 7  ;;  %v463_v38 = vrot.slane %v1198_v1, 1  ;;  %v470_v39 = vadd.f32 %v1196_v0, %v1198_v1  ;;  %v337_v41 = vand.u32 127, %v336_v31  ;;  %s752_s9 = smul.u32 768, %s1001_s15  ;;  %s573_s11 = scalar_lea.sflag [#allocation4], %s1182_s2 }
  0x55   : > { %vm460_vm1 = vcmp.lt.s32.totalorder %v1228_v32, 1  ;;  %vm465_vm2 = vcmp.lt.s32.totalorder %v1228_v32, 7  ;;  %v477_v40 = vsub.s32 1, %v1228_v32  ;;  %v481_v46 = vadd.f32 %v1200_v2, %v1204_v5  ;;  %s1283_s6 = scalar_lea.vmem [#allocation8], %s751_s5  ;;  %s1021_s20 = smov [#allocation8]  }
  0x56   : > { %v462_v42 = vsel %vm460_vm1, %v459_v35, %v458_v37  ;;  %v466_v43 = vsel %vm465_vm2, %v463_v38, %v464_v36  ;;  %vm341_vm3 = vcmp.eq.s32.totalorder %v337_v41, 0  ;;  %vm377_vm4 = vcmp.eq.s32.totalorder %v337_v41, 15  ;;  %s588_s19 = sshll.u32 %s1283_s6, 4  ;;  %s1336_s4 = scalar_lea.hbm %s1403_s3, %s752_s9  ;;  %s1338_s19 = int_to_ptr.vmem [resolvable:$true] %s588_s19 }
  0x57   : > { %346 = vrot.lane.b32.xlu1 %v1204_v5, %s1017_s18  ;;  %v468_v47 = vadd.f32 %v466_v43, %v462_v42  ;;  %v478_v48 = vrot.slane %v470_v39, %v477_v40  ;;  %vm454_vm5 = vcmp.eq.s32.totalorder %v1228_v32, 0  ;;  %v488_v49 = vsub.s32 6, %v1228_v32  ;;  %s925_s1 = scalar_lea.vmem %s1338_s19, 768  ;;  %s929_s21 = sshll.u32 %s1021_s20, 4  ;;  %s930_s21 = int_to_ptr.vmem [resolvable:$false] %s929_s21 }
  0x58   : > { %429 = vrot.lane.b32.xlu0 %v427_v6, %s1017_s18  ;;  %v1252_v50 = vadd.s32 8, %v1228_v32  ;;  %v461_v51 = vsel %vm460_vm1, %v458_v37, %v459_v35  ;;  %v467_v52 = vsel %vm465_vm2, %v464_v36, %v463_v38  ;;  %v1259_v55 = vand.u32 1, %v1228_v32  ;;  %p926_p8 = scmp.ne.s32.totalorder %s1338_s19, %s925_s1  ;;  %s931_s28 = scalar_lea.vmem %s930_s21, 1536 }
  0x59   : > { %v479_v58 = vsel %vm454_vm5, %v478_v48, %v468_v47  ;;  %v489_v60 = vrot.slane %v481_v46, %v488_v49  ;;  %v469_v61 = vadd.f32 %v467_v52, %v461_v51  ;;  %v1268_v62 = vand.u32 1, %v337_v41  ;;  %p932_p3 = scmp.lt.s32.totalorder %s1338_s19, %s930_s21  ;;  %p933_p4 = scmp.lt.s32.totalorder %s931_s28, %s925_s1 }
  0x5a   : > { %vm457_vm6 = vcmp.eq.s32.totalorder %v1252_v50, 15  ;;  %vm563_vm8 = vcmask 130048   ;;  %v518_v35 = vmul.f32 0.5, %v479_v58  ;;  %vm529_vm12 = vcmp.eq.s32.totalorder %v1259_v55, 0  ;;  %p927_p0 = pnand %p926_p8, %p1099_p9 }
  0x5b   : > { %vm559_vm7 = vcmp.ne.s32.totalorder %v1259_v55, %v1268_v62  ;;  %vm531_vm10 = vcmp.eq.s32.totalorder %v1268_v62, 0  ;;  %vm546_vm11 = vcmp.eq.s32.totalorder %v1268_v62, 1  ;;  %vm544_vm13 = vcmp.eq.s32.totalorder %v1259_v55, 1  ;;  %p934_p5 = por %p933_p4, %p932_p3 }
  0x5c   : > { %p928_p1 = pneg %p927_p0 }
  0x5e   : > { %p935_p6 = pnand %p934_p5, %p928_p1 }
  0xc5   : > { %v344_v8 = vpop.permute.xlu1 %343 }
  0xc6   : > { %v402_v9 = vpop.permute.xlu0 %401  ;;  %v345_v11 = vsel %vm342_vm0, %v344_v8, %v1198_v1  ;;  %v1276_v8 = vand.u32 1, %v1252_v50 }
  0xc7   : > { %v403_v10 = vsel %vm342_vm0, %v402_v9, %v399_v4  ;;  %v491_v9 = vsel %vm457_vm6, %v489_v60, %v469_v61 }
  0xc8   : > { %404 = vrot.lane.b32.xlu0 %v403_v10, %s1017_s18  ;;  %vm560_vm9 = vcmp.ne.s32.totalorder %v1276_v8, %v1268_v62  ;;  %v519_v43 = vmul.f32 0.5, %v491_v9  ;;  %vm530_vm14 = vcmp.eq.s32.totalorder %v1276_v8, 0  ;;  %vm545_vm15 = vcmp.eq.s32.totalorder %v1276_v8, 1 }
  0xc9   : > { %v347_v13 = vpop.permute.xlu1 %346 }
  0xca   : > { %v430_v12 = vpop.permute.xlu0 %429  ;;  %v348_v15 = vsel %vm342_vm0, %v347_v13, %v1204_v5 }
  0xcb   : > { %v431_v14 = vsel %vm342_vm0, %v430_v12, %v427_v6 }
  0xcc   : > { %432 = vrot.lane.b32.xlu1 %v431_v14, %s1017_s18  ;;  %349 = vrot.lane.b32.xlu0 %v345_v11, %s1017_s18 }
  0xd0   : > { %351 = vrot.lane.b32.xlu1 %v348_v15, %s1017_s18  ;;  %385 = vperm.xlu0 %836, %v1204_v5  }
  0xd4   : > { %364 = vperm.xlu1 %834, %v1204_v5   ;;  %837 = vset.pattern.permute.xlu0 %v1016_v3 }
  0xd5   : > { %359 = vperm.xlu0 %837, %v1198_v1  }
  0xd8   : > { %835 = vset.pattern.permute.xlu1 %v1018_v7 }
  0xd9   : > { %381 = vperm.xlu1 %835, %v1198_v1   ;;  %436 = vperm.xlu0 %837, %v1200_v2  }
  0xdd   : > { %838 = vset.pattern.permute.xlu1 %v1016_v3  ;;  %840 = vset.pattern.permute.xlu0 %v1018_v7 }
  0xde   : > { %408 = vperm.xlu1 %838, %v1196_v0  }
  0xe2   : > { %839 = vset.pattern.permute.xlu1 %v1018_v7 }
  0xe3   : > { %418 = vperm.xlu1 %839, %v1196_v0  }
  0xe7   : > { %446 = vperm.xlu1 %839, %v1200_v2  }
 0x13a   : > { %v405_v16 = vpop.permute.xlu0 %404 }
 0x13b   : > { %v406_v21 = vsel %vm342_vm0, %v405_v16, %v399_v4 }
 0x13c   : > { %v412_v23 = vrot.slane %v406_v21, 7 }
 0x13e   : > { %v350_v17 = vpop.permute.xlu0 %349  ;;  %v433_v18 = vpop.permute.xlu1 %432 }
 0x13f   : > { %v353_v19 = vsel %vm342_vm0, %v350_v17, %v1198_v1  ;;  %v434_v24 = vsel %vm342_vm0, %v433_v18, %v427_v6 }
 0x140   : > { %369 = vrot.lane.b32.xlu1 %v353_v19, %s1019_s24  ;;  %v440_v25 = vrot.slane %v434_v24, 2 }
 0x142   : > { %v352_v20 = vpop.permute.xlu1 %351 }
 0x143   : > { %v354_v22 = vsel %vm342_vm0, %v352_v20, %v1204_v5 }
 0x144   : > { %388 = vrot.lane.b32.xlu1 %v353_v19, %s1020_s10  ;;  %371 = vrot.lane.b32.xlu0 %v354_v22, %s1019_s24 }
 0x148   : > { %413 = vrot.lane.b32.xlu1 %v412_v23, %s1019_s24  ;;  %390 = vrot.lane.b32.xlu0 %v354_v22, %s1020_s10 }
 0x14b   : > { %v386_v29 = vpop.permute.xlu0 %385 }
 0x14c   : > { %441 = vrot.lane.b32.xlu1 %v440_v25, %s1019_s24  ;;  %421 = vrot.lane.b32.xlu0 %v412_v23, %s1020_s10 }
 0x14f   : > { %v365_v26 = vpop.permute.xlu1 %364 }
 0x150   : > { %449 = vrot.lane.b32.xlu0 %v440_v25, %s1020_s10  ;;  %v360_v33 = vpop.permute.xlu0 %359 }
 0x154   : > { %v382_v27 = vpop.permute.xlu1 %381  ;;  %v437_v44 = vpop.permute.xlu0 %436 }
 0x159   : > { %v409_v28 = vpop.permute.xlu1 %408 }
 0x15e   : > { %v419_v30 = vpop.permute.xlu1 %418 }
 0x162   : > { %v1230_v34 = vpop.permute.xlu1 %446 }
 0x1b2   : > { %v370_v45 = vpop.permute.xlu1 %369 }
 0x1b3   : > { %v375_v56 = vsel %vm341_vm3, %v360_v33, %v370_v45 }
 0x1b6   : > { %v372_v53 = vpop.permute.xlu0 %371  ;;  %v389_v54 = vpop.permute.xlu1 %388 }
 0x1b7   : > { %v394_v57 = vsel %vm377_vm4, %v382_v27, %v389_v54  ;;  %v376_v3 = vsel %vm341_vm3, %v365_v26, %v372_v53 }
 0x1b8   : > { %v396_v59 = vadd.f32 %v394_v57, %v375_v56 }
 0x1ba   : > { %v391_v63 = vpop.permute.xlu0 %390  ;;  %v414_v0 = vpop.permute.xlu1 %413  ;;  %v522_v2 = vadd.f32 %v479_v58, %v396_v59  ;;  %v492_v10 = vrot.slane %v396_v59, 7  ;;  %v496_v15 = vrot.slane %v396_v59, 1 }
 0x1bb   : > { %v395_v4 = vsel %vm377_vm4, %v386_v29, %v391_v63  ;;  %v416_v16 = vsel %vm341_vm3, %v409_v28, %v414_v0  ;;  %v516_v29 = vmul.f32 0.5, %v396_v59 }
 0x1bc   : > { %v397_v6 = vadd.f32 %v395_v4, %v376_v3  ;;  %v524_v7 = vmul.f32 0.25, %v522_v2 }
 0x1be   : > { %v493_v11 = vrot.slane %v397_v6, 7  ;;  %v497_v12 = vrot.slane %v397_v6, 1  ;;  %v422_v13 = vpop.permute.xlu0 %421  ;;  %v561_v14 = vsel %vm559_vm7, %v1198_v1, %v524_v7  ;;  %v523_v18 = vadd.f32 %v491_v9, %v397_v6  ;;  %v442_v20 = vpop.permute.xlu1 %441 }
 0x1bf   : > { %v424_v17 = vsel %vm377_vm4, %v419_v30, %v422_v13  ;;  %739 = vst.msk [vmem:[%s1283_s6 + $0x10] sm:$0xff] %vm563_vm8, %v561_v14  ;;  %v444_v26 = vsel %vm341_vm3, %v437_v44, %v442_v20  ;;  %v549_v44 = vsel %vm546_vm11, %v1198_v1, %v516_v29  ;;  %v517_v45 = vmul.f32 0.5, %v397_v6 }
 0x1c0   : > { %v425_v19 = vadd.f32 %v424_v17, %v416_v16  ;;  %v495_v21 = vsel %vm460_vm1, %v493_v11, %v492_v10  ;;  %v498_v22 = vsel %vm465_vm2, %v496_v15, %v497_v12  ;;  %v525_v23 = vmul.f32 0.25, %v523_v18 }
 0x1c1   : > { %v500_v30 = vadd.f32 %v498_v22, %v495_v21  ;;  %v494_v36 = vsel %vm460_vm1, %v492_v10, %v493_v11  ;;  %v550_v50 = vsel %vm546_vm11, %v1204_v5, %v517_v45 }
 0x1c2   : > { %v502_v24 = vadd.f32 %v425_v19, %v396_v59  ;;  %v450_v25 = vpop.permute.xlu0 %449  ;;  %v562_v28 = vsel %vm560_vm9, %v1204_v5, %v525_v23 }
 0x1c3   : > { %v452_v27 = vsel %vm377_vm4, %v1230_v34, %v450_v25  ;;  %740 = vst.msk [vmem:[%s1283_s6 + $0x18] sm:$0xff] %vm563_vm8, %v562_v28  ;;  %v499_v34 = vsel %vm465_vm2, %v497_v12, %v496_v15 }
 0x1c4   : > { %v506_v31 = vrot.slane %v502_v24, %v477_v40  ;;  %v453_v33 = vadd.f32 %v452_v27, %v444_v26  ;;  %v534_v40 = vsel %vm531_vm10, %v1198_v1, %v516_v29  ;;  %v501_v41 = vadd.f32 %v499_v34, %v494_v36 }
 0x1c6   : > { %v507_v37 = vsel %vm454_vm5, %v506_v31, %v500_v30  ;;  %v509_v38 = vadd.f32 %v453_v33, %v397_v6 }
 0x1c7   : > { %v520_v39 = vmul.f32 0.25, %v507_v37 }
 0x1c8   : > { %v513_v42 = vrot.slane %v509_v38, %v488_v49  ;;  %v535_v49 = vsel %vm531_vm10, %v1204_v5, %v517_v45 }
 0x1c9   : > { %v536_v46 = vsel %vm531_vm10, %v518_v35, %v520_v39  ;;  %v551_v47 = vsel %vm546_vm11, %v518_v35, %v520_v39 }
 0x1ca   : > { %v542_v48 = vsel %vm529_vm12, %v534_v40, %v536_v46  ;;  %v557_v51 = vsel %vm544_vm13, %v549_v44, %v551_v47  ;;  %v515_v32 = vsel %vm457_vm6, %v513_v42, %v501_v41 }
 0x1cb   : > { %564 = vst.msk [vmem:[%s1283_s6] sm:$0xff] %vm563_vm8, %v542_v48  ;;  %741 = vst.msk [vmem:[%s1283_s6 + $0x20] sm:$0xff] %vm563_vm8, %v557_v51  ;;  %v521_v1 = vmul.f32 0.25, %v515_v32 }
 0x1cd   : > { %v537_v52 = vsel %vm531_vm10, %v519_v43, %v521_v1  ;;  %v552_v53 = vsel %vm546_vm11, %v519_v43, %v521_v1 }
 0x1ce   : > { %v543_v54 = vsel %vm530_vm14, %v535_v49, %v537_v52  ;;  %v558_v55 = vsel %vm545_vm15, %v550_v50, %v552_v53 }
 0x1cf   : > { %565 = vst.msk [vmem:[%s1283_s6 + $0x8] sm:$0xff] %vm563_vm8, %v543_v54  ;;  %742 = vst.msk [vmem:[%s1283_s6 + $0x28] sm:$0xff] %vm563_vm8, %v558_v55 }
 0x1d0   : > { %938 = shalt.err (!%p935_p6)
}
 0x1d1   : > { %s939_s29 = scalar_lea.hbm %s1336_s4, 768  ;;  %s943_s7 = scalar_lea.hbm %s1403_s3, 1536 }
 0x1d2   : > { %p940_p7 = scmp.ne.s32.totalorder %s1336_s4, %s939_s29  ;;  %p944_p2 = scmp.lt.s32.totalorder %s1336_s4, %s1403_s3 }
 0x1d3   : > { %p945_p8 = scmp.lt.s32.totalorder %s943_s7, %s939_s29 }
 0x1d4   : > { %p941_p10 = pnand %p940_p7, %p1099_p9 }
 0x1d5   : > { %p946_p0 = por %p945_p8, %p944_p2 }
 0x1d6   : > { %p942_p13 = pneg %p941_p10 }
 0x1d8   : > { %p947_p1 = pnand %p946_p0, %p942_p13 }
 0x1da   : > { %950 = shalt.err (!%p947_p1)
}
 0x1db   : > { %s1022_s30 = smov 128   ;;  %s1023_s18 = smov 8  }
 0x1dc   : > { %759 = dma.vmem_to_hbm [thread:$0]  (%p1099_p9), %s1338_s19, 768, %s1336_s4, %s573_s11, %s1022_s30, %s1022_s30, %s1023_s18  }
 0x1dd PF: > { %s603_s24 = sand.u32 1, %s989_s12   ;;  %p772_p3 = pnand %p725_p12, %p1106_p11 }
 0x1de   : > { %s604_s10 = scalar_lea.sflag [#allocation4], %s603_s24 }
 0x1df   : > { %p773_p4 = pneg %p772_p3 }
 0x1e1   : > { %984 = dma.done.wait (%p773_p4), %s604_s10, 768  }
 0x1e2   : > { %986 = vsyncadd (%p773_p4), %s604_s10, 4294966528  ;;  %s22_s17 = sadd.s32 1, %s1009_s17   ;;  %s1422_s25 = sld [smem:[#allocation14_spill]] }
 0x1e3   : > { %p19_p5 = scmp.ge.s32.totalorder %s22_s17, 4   ;;  %s1423_s15 = sld [smem:[#allocation12_spill]] }
 0x1e4   : > { %s1424_s16 = sld [smem:[#allocation13_spill]]  ;;  %s1425_s12 = smov %s993_s13 }
 0x1e5   : > { %s1426_s13 = smov %s997_s14  ;;  %21 = sbr.rel (!%p19_p5) target bundleno = 11 (0xb), region = 103 }
 0x1e8   : > { %s1427_s14 = smov %s1422_s25 }
 0x1ea   :  { %609 = vsyncpa [#allocation3], 1 }
 0x1eb   :  { %611 = vsyncpa [#allocation3 + $0x1], 1 }
 0x1ec   :  { %612 = vsyncpa [#allocation6], 1 }
 0x1ed   :  { %614 = vsyncpa [#allocation6 + $0x1], 1 }
 0x1ee   :  { %615 = vsyncpa [#allocation4], 1 }
 0x1ef   :  { %617 = vsyncpa [#allocation4 + $0x1], 1 }

</bundles_post_ra>
